<compile_context>
chip_gen: v7x
topology: tpu7x:2x2x1
jax: 0.10.0
libtpu: 0.0.40
codegen_flags: <defaults>
</compile_context>

<pallas_src>
import functools
import math

import jax
import jax.numpy as jnp
from jax.experimental import pallas as pl
from jax.experimental.pallas import tpu as pltpu

INPUT_DIM = 2
N_EMBD = 8
N_HEAD = 4
HEAD_SIZE = N_EMBD // N_HEAD  # 2

TQ_MAX = 2048   # query-tile size (lane axis) upper bound
TK_MAX = 512    # key-tile size (sublane axis) upper bound

_NEG_INF = float("-inf")


def _round_up(x, m):
    return ((x + m - 1) // m) * m


def _lin_plus_head_attn(x, w, b):
    """Linear(input_dim -> n_embd) + per-sample SDPA over the head axis
    (seq-len = n_head, head dim = head_size), exactly as in the PyTorch
    forward.  O(N * 16) FLOPs -> hoisted to XLA (do not send K=2 / K=8
    matmuls to the MXU)."""
    y = x @ w.T + b                                        # [N, n_embd]
    y3 = y.reshape(-1, N_HEAD, HEAD_SIZE)
    s = jnp.einsum("bih,bjh->bij", y3, y3) / math.sqrt(HEAD_SIZE)
    p = jax.nn.softmax(s, axis=-1)
    y3 = jnp.einsum("bij,bjh->bih", p, y3)
    return y3.reshape(-1, N_EMBD)


def _cross_attn_kernel(qT_ref, k_ref, ov_ref, o_ref, m_ref, l_ref, acc_ref,
                       *, scale):
    """One (query-tile i, key-tile j) step of the streamed cross-attention.

    qT_ref : [n_embd, TQ]  bf16 queries, lane-dense (points on the lane axis)
    k_ref  : [TK, n_embd]  bf16 keys (padded key rows are zero)
    ov_ref : [2, TK]       bf16 aux: row 0 = ones, row 1 = value
                           (both zeroed on padded keys -> no mask needed)
    o_ref  : [8, TQ]       output slab (row 0 is the result)
    m/l/acc: [1, TQ]       f32 running max / denominator / weighted-value acc
    """
    j = pl.program_id(1)

    @pl.when(j == 0)
    def _():
        m_ref[...] = jnp.full_like(m_ref, _NEG_INF)
        l_ref[...] = jnp.zeros_like(l_ref)
        acc_ref[...] = jnp.zeros_like(acc_ref)

    # Transposed scores: keys on sublanes, queries on the 128-lane axis.
    # Scale is applied to the small [8, TQ] operand (weak python scalar keeps
    # it bf16); bf16 x bf16 MXU dot with f32 accumulation.
    s = jnp.dot(k_ref[...], qT_ref[...] * scale,
                preferred_element_type=jnp.float32)              # [TK, TQ] f32

    # Online softmax statistics in f32 (safe on v5e's f32-only VPU/EUP).
    # TODO(synk): on v6e/v7x the exp could run in bf16 for ~2x EUP throughput.
    m_prev = m_ref[...]                                           # [1, TQ]
    m_new = jnp.maximum(m_prev, jnp.max(s, axis=0, keepdims=True))
    alpha = jnp.exp(m_prev - m_new)                               # [1, TQ]
    p = jnp.exp(s - m_new)                                        # [TK, TQ]

    # Fused denominator + p·value on the MXU (replaces two XLU sublane
    # reductions): [2, TK] @ [TK, TQ] -> [2, TQ].  Padded keys have zero
    # ones/value entries, so they drop out here without any masking.
    lv = jnp.dot(ov_ref[...], p.astype(ov_ref.dtype),
                 preferred_element_type=jnp.float32)              # [2, TQ]

    l_ref[...] = alpha * l_ref[...] + lv[0:1, :]
    acc_ref[...] = alpha * acc_ref[...] + lv[1:2, :]
    m_ref[...] = m_new

    @pl.when(j == pl.num_programs(1) - 1)
    def _():
        # Exact divide (once per query tile) to keep accuracy margin.
        out = acc_ref[...] / l_ref[...]                           # [1, TQ]
        # Lane-dense, unmasked store: replicate across the 8 sublanes.
        o_ref[...] = jnp.broadcast_to(out, o_ref.shape)


@jax.jit
def plane_model_forward(query, key, value, params):
    wd, bd, we, be = params
    nq = query.shape[0]
    nk = key.shape[0]

    # Hoisted pre-processing (tiny linears + per-head self-attention) -> XLA.
    q = _lin_plus_head_attn(query.astype(jnp.float32), wd, bd)      # [Nq, 8]
    k = _lin_plus_head_attn(key.astype(jnp.float32), we, be)        # [Nk, 8]

    tq = min(TQ_MAX, _round_up(nq, 128))
    tk = min(TK_MAX, _round_up(nk, 128))
    nq_pad = _round_up(nq, tq)
    nk_pad = _round_up(nk, tk)

    # Point-major / lane-dense layout: queries on the 128-lane axis.
    # bf16 operands for the MXU (accumulation stays f32 in-kernel).
    qT = jnp.pad(q.T, ((0, 0), (0, nq_pad - nq))).astype(jnp.bfloat16)
    kp = jnp.pad(k, ((0, nk_pad - nk), (0, 0))).astype(jnp.bfloat16)

    # Aux operand [2, Nk_pad]: row 0 = ones (denominator), row 1 = value,
    # both zero on padded keys — this folds the padding mask out of the
    # kernel entirely.
    ov = jnp.stack([jnp.ones((nk,), jnp.float32),
                    value.astype(jnp.float32)], axis=0)             # [2, Nk]
    ov = jnp.pad(ov, ((0, 0), (0, nk_pad - nk))).astype(jnp.bfloat16)

    grid = (nq_pad // tq, nk_pad // tk)
    kernel = functools.partial(_cross_attn_kernel,
                               scale=1.0 / math.sqrt(N_EMBD))

    out = pl.pallas_call(
        kernel,
        out_shape=jax.ShapeDtypeStruct((8, nq_pad), jnp.float32),
        grid_spec=pltpu.PrefetchScalarGridSpec(
            num_scalar_prefetch=0,
            grid=grid,
            in_specs=[
                pl.BlockSpec((N_EMBD, tq), lambda i, j: (0, i)),    # qT
                pl.BlockSpec((tk, N_EMBD), lambda i, j: (j, 0)),    # keys
                pl.BlockSpec((2, tk), lambda i, j: (0, j)),         # ones/value
            ],
            out_specs=pl.BlockSpec((8, tq), lambda i, j: (0, i)),
            scratch_shapes=[
                pltpu.VMEM((1, tq), jnp.float32),   # running max
                pltpu.VMEM((1, tq), jnp.float32),   # running denominator
                pltpu.VMEM((1, tq), jnp.float32),   # weighted-value acc
            ],
        ),
        compiler_params=pltpu.CompilerParams(
            # On v7x (2 TensorCores) the query axis could use CORE_PARALLEL
            # to split across cores; kept "parallel" here for portability
            # across v5e/v6e (single TC).
            dimension_semantics=("parallel", "arbitrary"),
            vmem_limit_bytes=48 * 1024 * 1024,
        ),
    )(qT, kp, ov)

    return out[0, :nq].reshape(nq, 1)


def reference_forward(query, key, value, params):
    """Pure-JAX reference of the PyTorch forward, for validation."""
    wd, bd, we, be = params
    q = _lin_plus_head_attn(query, wd, bd)
    k = _lin_plus_head_attn(key, we, be)
    wei = jax.nn.softmax((q @ k.T) / math.sqrt(N_EMBD), axis=-1)
    return wei @ value.reshape(-1, 1)


if __name__ == "__main__":
    root = jax.random.PRNGKey(0)
    k_wd, k_we = jax.random.split(root, 2)

    # nn.init.normal_(std=0.02) weights, zero biases (as in _init_weights).
    wd = 0.02 * jax.random.normal(k_wd, (N_EMBD, INPUT_DIM), dtype=jnp.float32)
    bd = jnp.zeros((N_EMBD,), dtype=jnp.float32)
    we = 0.02 * jax.random.normal(k_we, (N_EMBD, INPUT_DIM), dtype=jnp.float32)
    be = jnp.zeros((N_EMBD,), dtype=jnp.float32)
    params = (wd, bd, we, be)

    # Small, deliberately non-128-aligned sizes: exercises padding (now folded
    # into the aux operand) and, in the second case, the multi-tile online
    # softmax over Nk.
    for case, (NQ, NK) in enumerate([(40, 72), (300, 513)]):
        kq, kk, kv = jax.random.split(jax.random.fold_in(root, case), 3)
        query = jax.random.normal(kq, (NQ, INPUT_DIM), dtype=jnp.float32)
        keyp = jax.random.normal(kk, (NK, INPUT_DIM), dtype=jnp.float32)
        value = jax.random.normal(kv, (NK,), dtype=jnp.float32)

        out = jax.block_until_ready(
            plane_model_forward(query, keyp, value, params))
        ref = reference_forward(query, keyp, value, params)

        assert out.shape == (NQ, 1), out.shape
        err = float(jnp.max(jnp.abs(out - ref)))
        assert err < 2e-3, (case, NQ, NK, err)

    print("KERNEL_OK")
</pallas_src>

<mosaic_0001>
module attributes {stable_mosaic.version = 11 : i64} {
  func.func @_cross_attn_kernel(%arg0: i32, %arg1: i32, %arg2: memref<8x128xbf16, #tpu.memory_space<vmem>>, %arg3: memref<128x8xbf16, #tpu.memory_space<vmem>>, %arg4: memref<2x128xbf16, #tpu.memory_space<vmem>>, %arg5: memref<8x128xf32, #tpu.memory_space<vmem>>, %arg6: memref<1x128xf32, #tpu.memory_space<vmem>>, %arg7: memref<1x128xf32, #tpu.memory_space<vmem>>, %arg8: memref<1x128xf32, #tpu.memory_space<vmem>>) attributes {dimension_semantics = [#tpu.dimension_semantics<parallel>, #tpu.dimension_semantics<arbitrary>], iteration_bounds = array<i64: 1, 1>, scalar_prefetch = 0 : i64, scratch_operands = 3 : i64, tpu.core_type = #tpu.core_type<tc>, window_params = [{transform_indices = @transform_0, window_bounds = array<i64: 8, 128>}, {transform_indices = @transform_1, window_bounds = array<i64: 128, 8>}, {transform_indices = @transform_2, window_bounds = array<i64: 2, 128>}, {transform_indices = @transform_3, window_bounds = array<i64: 8, 128>}]} {
    %c0_i32 = arith.constant 0 : i32
    %0 = arith.cmpi eq, %arg1, %c0_i32 : i32
    %1 = arith.extui %0 : i1 to i32
    %c0_i32_0 = arith.constant 0 : i32
    %2 = arith.cmpi ne, %1, %c0_i32_0 : i32
    scf.if %2 {
      %cst_23 = arith.constant 0xFF800000 : f32
      %34 = vector.broadcast %cst_23 : f32 to vector<1x128xf32>
      %c0_24 = arith.constant 0 : index
      %c0_25 = arith.constant 0 : index
      %35 = vector.load %arg6[%c0_24, %c0_25] : memref<1x128xf32, #tpu.memory_space<vmem>>, vector<1x128xf32>
      tpu.vector_store %arg6[%c0_24, %c0_25], %34 {strides = array<i32>} : memref<1x128xf32, #tpu.memory_space<vmem>>, vector<1x128xf32>,
      %cst_26 = arith.constant 0.000000e+00 : f32
      %36 = vector.broadcast %cst_26 : f32 to vector<1x128xf32>
      %c0_27 = arith.constant 0 : index
      %c0_28 = arith.constant 0 : index
      %37 = vector.load %arg7[%c0_27, %c0_28] : memref<1x128xf32, #tpu.memory_space<vmem>>, vector<1x128xf32>
      tpu.vector_store %arg7[%c0_27, %c0_28], %36 {strides = array<i32>} : memref<1x128xf32, #tpu.memory_space<vmem>>, vector<1x128xf32>,
      %cst_29 = arith.constant 0.000000e+00 : f32
      %38 = vector.broadcast %cst_29 : f32 to vector<1x128xf32>
      %c0_30 = arith.constant 0 : index
      %c0_31 = arith.constant 0 : index
      %39 = vector.load %arg8[%c0_30, %c0_31] : memref<1x128xf32, #tpu.memory_space<vmem>>, vector<1x128xf32>
      tpu.vector_store %arg8[%c0_30, %c0_31], %38 {strides = array<i32>} : memref<1x128xf32, #tpu.memory_space<vmem>>, vector<1x128xf32>,
    } else {
    }
    %c0 = arith.constant 0 : index
    %c0_1 = arith.constant 0 : index
    %3 = vector.load %arg3[%c0, %c0_1] : memref<128x8xbf16, #tpu.memory_space<vmem>>, vector<128x8xbf16>
    %c0_2 = arith.constant 0 : index
    %c0_3 = arith.constant 0 : index
    %4 = vector.load %arg2[%c0_2, %c0_3] : memref<8x128xbf16, #tpu.memory_space<vmem>>, vector<8x128xbf16>
    %cst = arith.constant 3.535160e-01 : bf16
    %5 = vector.broadcast %cst : bf16 to vector<8x128xbf16>
    %6 = arith.mulf %4, %5 : vector<8x128xbf16>
    %cst_4 = arith.constant dense<0.000000e+00> : vector<128x128xf32>
    %7 = tpu.matmul %3, %6, %cst_4 {dimension_numbers = #tpu.dot_dimension_numbers<[1], [0], [0], [1], [0, 0, 1, 1], [], []>} : vector<128x8xbf16>, vector<8x128xbf16>, vector<128x128xf32> -> vector<128x128xf32>
    %c0_5 = arith.constant 0 : index
    %c0_6 = arith.constant 0 : index
    %8 = vector.load %arg6[%c0_5, %c0_6] : memref<1x128xf32, #tpu.memory_space<vmem>>, vector<1x128xf32>
    %cst_7 = arith.constant dense<0xFF800000> : vector<128xf32>
    %9 = vector.multi_reduction <maximumf>, %7, %cst_7 [0] : vector<128x128xf32> to vector<128xf32>
    %10 = vector.shape_cast %9 : vector<128xf32> to vector<1x128xf32>
    %11 = arith.maximumf %8, %10 : vector<1x128xf32>
    %12 = arith.subf %8, %11 : vector<1x128xf32>
    %13 = math.exp %12 : vector<1x128xf32>
    %14 = vector.broadcast %11 : vector<1x128xf32> to vector<128x128xf32>
    %15 = arith.subf %7, %14 : vector<128x128xf32>
    %16 = math.exp %15 : vector<128x128xf32>
    %c0_8 = arith.constant 0 : index
    %c0_9 = arith.constant 0 : index
    %17 = vector.load %arg4[%c0_8, %c0_9] : memref<2x128xbf16, #tpu.memory_space<vmem>>, vector<2x128xbf16>
    %18 = arith.truncf %16 : vector<128x128xf32> to vector<128x128xbf16>
    %cst_10 = arith.constant dense<0.000000e+00> : vector<2x128xf32>
    %19 = tpu.matmul %17, %18, %cst_10 {dimension_numbers = #tpu.dot_dimension_numbers<[1], [0], [0], [1], [0, 0, 1, 1], [], []>} : vector<2x128xbf16>, vector<128x128xbf16>, vector<2x128xf32> -> vector<2x128xf32>
    %c0_11 = arith.constant 0 : index
    %c0_12 = arith.constant 0 : index
    %20 = vector.load %arg7[%c0_11, %c0_12] : memref<1x128xf32, #tpu.memory_space<vmem>>, vector<1x128xf32>
    %21 = arith.mulf %13, %20 : vector<1x128xf32>
    %22 = vector.extract_strided_slice %19 {offsets = [0, 0], sizes = [1, 128], strides = [1, 1]} : vector<2x128xf32> to vector<1x128xf32>
    %23 = arith.addf %21, %22 : vector<1x128xf32>
    %c0_13 = arith.constant 0 : index
    %c0_14 = arith.constant 0 : index
    %24 = vector.load %arg7[%c0_13, %c0_14] : memref<1x128xf32, #tpu.memory_space<vmem>>, vector<1x128xf32>
    tpu.vector_store %arg7[%c0_13, %c0_14], %23 {strides = array<i32>} : memref<1x128xf32, #tpu.memory_space<vmem>>, vector<1x128xf32>,
    %c0_15 = arith.constant 0 : index
    %c0_16 = arith.constant 0 : index
    %25 = vector.load %arg8[%c0_15, %c0_16] : memref<1x128xf32, #tpu.memory_space<vmem>>, vector<1x128xf32>
    %26 = arith.mulf %13, %25 : vector<1x128xf32>
    %27 = vector.extract_strided_slice %19 {offsets = [1, 0], sizes = [1, 128], strides = [1, 1]} : vector<2x128xf32> to vector<1x128xf32>
    %28 = arith.addf %26, %27 : vector<1x128xf32>
    %c0_17 = arith.constant 0 : index
    %c0_18 = arith.constant 0 : index
    %29 = vector.load %arg8[%c0_17, %c0_18] : memref<1x128xf32, #tpu.memory_space<vmem>>, vector<1x128xf32>
    tpu.vector_store %arg8[%c0_17, %c0_18], %28 {strides = array<i32>} : memref<1x128xf32, #tpu.memory_space<vmem>>, vector<1x128xf32>,
    %c0_19 = arith.constant 0 : index
    %c0_20 = arith.constant 0 : index
    %30 = vector.load %arg6[%c0_19, %c0_20] : memref<1x128xf32, #tpu.memory_space<vmem>>, vector<1x128xf32>
    tpu.vector_store %arg6[%c0_19, %c0_20], %11 {strides = array<i32>} : memref<1x128xf32, #tpu.memory_space<vmem>>, vector<1x128xf32>,
    %c0_i32_21 = arith.constant 0 : i32
    %31 = arith.cmpi eq, %arg1, %c0_i32_21 : i32
    %32 = arith.extui %31 : i1 to i32
    %c0_i32_22 = arith.constant 0 : i32
    %33 = arith.cmpi ne, %32, %c0_i32_22 : i32
    scf.if %33 {
      %c0_23 = arith.constant 0 : index
      %c0_24 = arith.constant 0 : index
      %34 = vector.load %arg8[%c0_23, %c0_24] : memref<1x128xf32, #tpu.memory_space<vmem>>, vector<1x128xf32>
      %c0_25 = arith.constant 0 : index
      %c0_26 = arith.constant 0 : index
      %35 = vector.load %arg7[%c0_25, %c0_26] : memref<1x128xf32, #tpu.memory_space<vmem>>, vector<1x128xf32>
      %36 = arith.divf %34, %35 : vector<1x128xf32>
      %37 = vector.shape_cast %36 : vector<1x128xf32> to vector<1x128xf32>
      %38 = vector.broadcast %37 : vector<1x128xf32> to vector<8x128xf32>
      %c0_27 = arith.constant 0 : index
      %c0_28 = arith.constant 0 : index
      %39 = vector.load %arg5[%c0_27, %c0_28] : memref<8x128xf32, #tpu.memory_space<vmem>>, vector<8x128xf32>
      tpu.vector_store %arg5[%c0_27, %c0_28], %38 {strides = array<i32>} : memref<8x128xf32, #tpu.memory_space<vmem>>, vector<8x128xf32>,
    } else {
    }
    return
  }
  func.func @transform_0(%arg0: i32, %arg1: i32) -> (i32, i32) {
    %c0_i32 = arith.constant 0 : i32
    %c0_i32_0 = arith.constant 0 : i32
    return %c0_i32, %arg0 : i32, i32
  }
  func.func @transform_1(%arg0: i32, %arg1: i32) -> (i32, i32) {
    %c0_i32 = arith.constant 0 : i32
    %c0_i32_0 = arith.constant 0 : i32
    return %arg1, %c0_i32 : i32, i32
  }
  func.func @transform_2(%arg0: i32, %arg1: i32) -> (i32, i32) {
    %c0_i32 = arith.constant 0 : i32
    %c0_i32_0 = arith.constant 0 : i32
    return %c0_i32, %arg1 : i32, i32
  }
  func.func @transform_3(%arg0: i32, %arg1: i32) -> (i32, i32) {
    %c0_i32 = arith.constant 0 : i32
    %c0_i32_0 = arith.constant 0 : i32
    return %c0_i32, %arg0 : i32, i32
  }
}

</mosaic_0001>

<bundles_post_ra>
// kernel: plane_model_forward.1
= control target key start
LH: loop header
LB: loop body
LE: loop exit
PB: predicated region body
PF: predicated region fallthrough
CT: control target
= control target key end

     0   :  { %vm106_vm0 = vcmask 1043456   ;;  %vm81_vm1 = vcmask 64512   ;;  %v501_v11 = vmov -inf   ;;  %v502_v12 = vmov 0.0   ;;  %s621_s0 = inlined_call_operand.vmem [shape: bf16[8,128], index: 0, kind: input, shape index: {}]   ;;  %s622_s1 = inlined_call_operand.vmem [shape: bf16[128,8], index: 1, kind: input, shape index: {}]   ;;  %s623_s2 = inlined_call_operand.vmem [shape: bf16[2,128], index: 2, kind: input, shape index: {}]   ;;  %s624_s3 = inlined_call_operand.vmem [shape: f32[8,128], index: 3, kind: output, shape index: {}]  }
   0x1   :  { %v39_v0 = vld [vmem:[%s621_s0] sm:$0xf]  ;;  %v458_v4 = vld [vmem:[%s622_s1 + $0x8] sm:$0xff]   ;;  %v459_v5 = vld [vmem:[%s622_s1 + $0x10] sm:$0xff]   ;;  %20 = vst [vmem:[#allocation2] sm:$0x1] %v501_v11  ;;  %432 = vmatprep.subr.bf16.mxu1 %v502_v12  ;;  %v234_v46 = vlaneseq }
   0x2   :  { %v40_v1 = vmul.bf16 1052065461, %v39_v0  ;;  %v457_v2 = vld [vmem:[%s622_s1] sm:$0xff]   ;;  %v460_v6 = vld [vmem:[%s622_s1 + $0x18] sm:$0xff]   ;;  %v462_v8 = vld [vmem:[%s622_s1 + $0x28] sm:$0xff]   ;;  %vm503_vm2 = vmmov 0  }
   0x3   :  { %416 = vmatprep.mubr.msk.bf16.mxu0 %vm81_vm1, %v457_v2  ;;  %v461_v7 = vld [vmem:[%s622_s1 + $0x20] sm:$0xff]   ;;  %v463_v9 = vld [vmem:[%s622_s1 + $0x30] sm:$0xff]   ;;  %v464_v10 = vld [vmem:[%s622_s1 + $0x38] sm:$0xff]   ;;  %21 = vst [vmem:[#allocation3] sm:$0x1] %v502_v12  ;;  %448 = vmatprep.mubr.msk.bf16.mxu1 %vm503_vm2, %v502_v12  ;;  %v582_v49 = vshrl.u32 %v234_v46, 7 }
   0x4   :  { %452 = vmatprep.subr.msk.bf16.mxu0 %vm106_vm0, %v40_v1  ;;  %v108_v3 = vsel %vm106_vm0, %v40_v1, 0  ;;  %22 = vst [vmem:[#allocation4] sm:$0x1] %v502_v12 }
   0x5   :  { %415 = vmatpush3.bf16.msra.mxu0 %v108_v3  ;;  %v236_v53 = vsub.s32 0, %v582_v49 }
   0x8   :  { %417 = vmatmul.mubr.msk.bf16.vlgmr.msra.gmra.mrb[0].mxu0 %vm81_vm1, %v458_v4  ;;  %v584_v51 = vld [vmem:[#allocation2] sm:$0x1] }
   0x9   :  { %420 = vmatprep.mubr.msk.bf16.mxu0 %vm81_vm1, %v459_v5 }
  0x10   :  { %421 = vmatmul.mubr.msk.bf16.gmra.mrb[4].mxu0 %vm81_vm1, %v460_v6 }
  0x11   :  { %424 = vmatprep.mubr.msk.bf16.mxu0 %vm81_vm1, %v461_v7 }
  0x18   :  { %425 = vmatmul.mubr.msk.bf16.gmra.mrb[8].mxu0 %vm81_vm1, %v462_v8 }
  0x19   :  { %428 = vmatprep.mubr.msk.bf16.mxu0 %vm81_vm1, %v463_v9 }
  0x20   :  { %429 = vmatmul.mubr.msk.bf16.gmra.mrb[12].mxu0 %vm81_vm1, %v464_v10 }
  0xdb   :  { %v418_v13 = vpop.f32.mrb[0].mxu0 }
  0xdc   :  { %v144_v14 = vpop.f32.mrb[1].mxu0 }
  0xdd   :  { %v419_v15 = vpop.f32.mrb[2].mxu0 }
  0xde   :  { %v147_v16 = vpop.f32.mrb[3].mxu0 }
  0xe3   :  { %v564_v17 = vpop.f32.mrb[4].mxu0 }
  0xe4   :  { %v210_v18 = vmax.f32 %v418_v13, %v564_v17  ;;  %v160_v19 = vpop.f32.mrb[5].mxu0 }
  0xe5   :  { %v208_v20 = vmax.f32 %v144_v14, %v160_v19  ;;  %v567_v21 = vpop.f32.mrb[6].mxu0 }
  0xe6   :  { %v211_v22 = vmax.f32 %v419_v15, %v567_v21  ;;  %v163_v23 = vpop.f32.mrb[7].mxu0 }
  0xe7   :  { %v209_v24 = vmax.f32 %v147_v16, %v163_v23 }
  0xeb   :  { %v570_v25 = vpop.f32.mrb[8].mxu0 }
  0xec   :  { %v214_v26 = vmax.f32 %v210_v18, %v570_v25  ;;  %v176_v27 = vpop.f32.mrb[9].mxu0 }
  0xed   :  { %v212_v28 = vmax.f32 %v208_v20, %v176_v27  ;;  %v573_v29 = vpop.f32.mrb[10].mxu0 }
  0xee   :  { %v215_v30 = vmax.f32 %v211_v22, %v573_v29  ;;  %v179_v31 = vpop.f32.mrb[11].mxu0 }
  0xef   :  { %v213_v32 = vmax.f32 %v209_v24, %v179_v31 }
  0xf3   :  { %v576_v33 = vpop.f32.mrb[12].mxu0 }
  0xf4   :  { %v218_v34 = vmax.f32 %v214_v26, %v576_v33  ;;  %v192_v35 = vpop.f32.mrb[13].mxu0 }
  0xf5   :  { %v216_v36 = vmax.f32 %v212_v28, %v192_v35  ;;  %v579_v37 = vpop.f32.mrb[14].mxu0 }
  0xf6   :  { %v219_v38 = vmax.f32 %v215_v30, %v579_v37  ;;  %v195_v39 = vpop.f32.mrb[15].mxu0 }
  0xf7   :  { %v217_v40 = vmax.f32 %v213_v32, %v195_v39 }
  0xf8   :  { %v221_v41 = vmax.f32 %v218_v34, %v219_v38 }
  0xf9   :  { %v220_v42 = vmax.f32 %v216_v36, %v217_v40 }
  0xfb   :  { %v222_v43 = vmax.f32 %v220_v42, %v221_v41 }
  0xfd   :  { %v223_v44 = vrot.slane %v222_v43, 4 }
  0xff   :  { %v224_v45 = vmax.f32 %v222_v43, %v223_v44 }
 0x101   :  { %v225_v47 = vrot.slane %v224_v45, 2 }
 0x103   :  { %v226_v48 = vmax.f32 %v224_v45, %v225_v47 }
 0x105   :  { %v227_v50 = vrot.slane %v226_v48, 1 }
 0x107   :  { %v228_v52 = vmax.f32 %v226_v48, %v227_v50 }
 0x109   :  { %v588_v54 = vmax.f32 %v584_v51, %v228_v52  ;;  %v287_v52 = vld [vmem:[%s623_s2] sm:$0x1] }
 0x10b   :  { %v237_v55 = vrot.slane %v588_v54, %v236_v53  ;;  %361 = vst [vmem:[#allocation2] sm:$0x1] %v588_v54  ;;  %v230_v56 = vsub.f32 %v584_v51, %v588_v54 }
 0x10d   :  { %v252_v57 = vsub.f32 %v195_v39, %v237_v55  ;;  %v239_v58 = vsub.f32 %v144_v14, %v237_v55  ;;  %v240_v59 = vsub.f32 %v147_v16, %v237_v55  ;;  %v241_v60 = vsub.f32 %v418_v13, %v237_v55 }
 0x10e   :  { %v242_v61 = vsub.f32 %v419_v15, %v237_v55  ;;  %v243_v62 = vsub.f32 %v160_v19, %v237_v55  ;;  %v244_v63 = vsub.f32 %v163_v23, %v237_v55  ;;  %v245_v0 = vsub.f32 %v564_v17, %v237_v55 }
 0x10f   :  { %v281_v1 = vmul.f32 1.442695, %v252_v57  ;;  %v255_v2 = vmul.f32 1.442695, %v239_v58  ;;  %v257_v3 = vmul.f32 1.442695, %v240_v59  ;;  %v246_v4 = vsub.f32 %v567_v21, %v237_v55 }
 0x110   :  { %v259_v5 = vmul.f32 1.442695, %v241_v60  ;;  %v247_v6 = vsub.f32 %v176_v27, %v237_v55  ;;  %v261_v7 = vmul.f32 1.442695, %v242_v61  ;;  %v263_v8 = vmul.f32 1.442695, %v243_v62 }
 0x111   :  { %465 = vpow2.f32 %v281_v1  ;;  %v265_v9 = vmul.f32 1.442695, %v244_v63  ;;  %v248_v10 = vsub.f32 %v179_v31, %v237_v55  ;;  %v249_v11 = vsub.f32 %v570_v25, %v237_v55  ;;  %v336_v61 = vld [vmem:[#allocation3] sm:$0x1] }
 0x112   :  { %467 = vpow2.f32 %v255_v2  ;;  %v250_v13 = vsub.f32 %v573_v29, %v237_v55  ;;  %v251_v14 = vsub.f32 %v192_v35, %v237_v55  ;;  %v253_v15 = vsub.f32 %v576_v33, %v237_v55 }
 0x113   :  { %469 = vpow2.f32 %v257_v3  ;;  %v267_v16 = vmul.f32 1.442695, %v245_v0  ;;  %v254_v17 = vsub.f32 %v579_v37, %v237_v55  ;;  %v269_v18 = vmul.f32 1.442695, %v246_v4  ;;  %v340_v3 = vld [vmem:[#allocation4] sm:$0x1] }
 0x114   :  { %471 = vpow2.f32 %v259_v5  ;;  %v271_v19 = vmul.f32 1.442695, %v247_v6  ;;  %v273_v20 = vmul.f32 1.442695, %v248_v10  ;;  %v275_v21 = vmul.f32 1.442695, %v249_v11 }
 0x115   :  { %473 = vpow2.f32 %v261_v7  ;;  %v277_v22 = vmul.f32 1.442695, %v250_v13  ;;  %v279_v23 = vmul.f32 1.442695, %v251_v14  ;;  %v283_v25 = vmul.f32 1.442695, %v253_v15 }
 0x116   :  { %475 = vpow2.f32 %v263_v8  ;;  %v285_v27 = vmul.f32 1.442695, %v254_v17  ;;  %v231_v55 = vmul.f32 1.442695, %v230_v56  ;;  %v504_v57 = vmov 1966171168  }
 0x117   :  { %477 = vpow2.f32 %v265_v9  ;;  %v344_v58 = vunpack.c.l.s4 %v504_v57 }
 0x118   :  { %479 = vpow2.f32 %v267_v16 }
 0x119   :  { %481 = vpow2.f32 %v269_v18  ;;  %v345_v59 = vunpack.c.0.s8 %v344_v58 }
 0x11a   :  { %483 = vpow2.f32 %v271_v19 }
 0x11b   :  { %v466_v24 = vpop.eup %465  ;;  %485 = vpow2.f32 %v273_v20  ;;  %v348_v62 = vsub.s32 %v345_v59, %v582_v49 }
 0x11c   :  { %v468_v26 = vpop.eup %467  ;;  %487 = vpow2.f32 %v275_v21 }
 0x11d   :  { %v470_v28 = vpop.eup %469  ;;  %489 = vpow2.f32 %v277_v22 }
 0x11e   :  { %v472_v29 = vpop.eup %471  ;;  %v288_v30 = vpack.c.bf16 %v470_v28, %v468_v26  ;;  %491 = vpow2.f32 %v279_v23 }
 0x11f   :  { %v474_v31 = vpop.eup %473  ;;  %493 = vpow2.f32 %v283_v25 }
 0x120   :  { %v476_v32 = vpop.eup %475  ;;  %433 = vmatpush3.bf16.msra.mxu1 %v288_v30  ;;  %v289_v33 = vpack.c.bf16 %v474_v31, %v472_v29  ;;  %495 = vpow2.f32 %v285_v27 }
 0x121   :  { %v478_v34 = vpop.eup %477  ;;  %434 = vmatprep.subr.bf16.mxu1 %v502_v12  ;;  %497 = vpow2.f32 %v231_v55 }
 0x122   :  { %v480_v35 = vpop.eup %479  ;;  %v290_v36 = vpack.c.bf16 %v478_v34, %v476_v32 }
 0x123   :  { %v482_v37 = vpop.eup %481 }
 0x124   :  { %v484_v38 = vpop.eup %483  ;;  %435 = vmatpush3.bf16.msra.mxu1 %v289_v33  ;;  %v291_v39 = vpack.c.bf16 %v482_v37, %v480_v35 }
 0x125   :  { %v486_v40 = vpop.eup %485  ;;  %436 = vmatprep.subr.bf16.mxu1 %v502_v12 }
 0x126   :  { %v488_v41 = vpop.eup %487  ;;  %v292_v42 = vpack.c.bf16 %v486_v40, %v484_v38 }
 0x127   :  { %v490_v43 = vpop.eup %489 }
 0x128   :  { %v492_v44 = vpop.eup %491  ;;  %437 = vmatpush3.bf16.msra.mxu1 %v290_v36  ;;  %v293_v45 = vpack.c.bf16 %v490_v43, %v488_v41 }
 0x129   :  { %v494_v46 = vpop.eup %493  ;;  %438 = vmatprep.subr.bf16.mxu1 %v502_v12  ;;  %v294_v47 = vpack.c.bf16 %v466_v24, %v492_v44 }
 0x12a   :  { %v496_v48 = vpop.eup %495 }
 0x12b   :  { %v295_v50 = vpack.c.bf16 %v496_v48, %v494_v46  ;;  %v498_v60 = vpop.eup %497 }
 0x12c   :  { %439 = vmatpush3.bf16.msra.mxu1 %v291_v39  ;;  %v337_v63 = vmul.f32 %v498_v60, %v336_v61  ;;  %v341_v51 = vmul.f32 %v498_v60, %v340_v3 }
 0x12d   :  { %440 = vmatprep.subr.bf16.mxu1 %v502_v12 }
 0x130   :  { %441 = vmatpush3.bf16.msra.mxu1 %v292_v42 }
 0x131   :  { %442 = vmatprep.subr.bf16.mxu1 %v502_v12 }
 0x134   :  { %443 = vmatpush3.bf16.msra.mxu1 %v293_v45 }
 0x135   :  { %444 = vmatprep.subr.bf16.mxu1 %v502_v12 }
 0x138   :  { %445 = vmatpush3.bf16.msra.mxu1 %v294_v47 }
 0x139   :  { %446 = vmatprep.subr.bf16.mxu1 %v502_v12 }
 0x13c   :  { %447 = vmatpush3.bf16.msra.mxu1 %v295_v50 }
 0x13f   :  { %449 = vmatmul.mubr.bf16.vlgmr.msra.gmra.mrb[0].mxu1 %v287_v52 }
 0x212   :  { %v330_v12 = vpop.f32.mrb[0].mxu1 }
 0x213   :  { %v338_v0 = vadd.f32 %v337_v63, %v330_v12  ;;  %v349_v1 = vrot.slane %v330_v12, %v348_v62  ;;  %v450_v2 = vpop.f32.mrb[1].mxu1 }
 0x214   :  { %v333_v4 = vpop.f32.mrb[2].mxu1 }
 0x215   :  { %339 = vst [vmem:[#allocation3] sm:$0x1] %v338_v0  ;;  %v350_v5 = vcombine.high %v349_v1, %v349_v1  ;;  %v451_v6 = vpop.f32.mrb[3].mxu1 }
 0x217   :  { %v357_v54 = vrot.slane %v350_v5, %v348_v62 }
 0x219   :  { %v359_v56 = vadd.f32 %v357_v54, %v341_v51 }
 0x21b   :  { %360 = vst [vmem:[#allocation4] sm:$0x1] %v359_v56 }
 0x21c   :  { %v366_v7 = vld [vmem:[#allocation3] sm:$0x1] }
 0x21d   :  { %499 = vrcp.f32 %v366_v7 }
 0x222   :  { %v365_v9 = vld [vmem:[#allocation4] sm:$0x1] }
 0x227   :  { %v500_v8 = vpop.eup %499 }
 0x228   :  { %v368_v10 = vmul.f32 %v500_v8, %v365_v9 }
 0x22a   :  { %v373_v11 = vrot.slane %v368_v10, %v236_v53 }
 0x22c   :  { %375 = vst [vmem:[%s624_s3] sm:$0xff] %v373_v11 }

</bundles_post_ra>
